<compile_context>
chip_gen: v7x
topology: tpu7x:2x2x1
jax: 0.10.0
libtpu: 0.0.40
codegen_flags: <defaults>
</compile_context>

<pallas_src>
import jax
import jax.numpy as jnp
from jax.experimental import pallas as pl
from jax.experimental.pallas import tpu as pltpu

IN_DIM = 28 * 28        # 784
MID = 100
BOTTLENECK = 2
MID_P = 128             # hidden dim padded to one full lane group
OUT_P = 896             # 7 * 128, lane-dense output slab


def _round_up(x, m):
    return ((x + m - 1) // m) * m


def _sigmoid(x):
    # sigmoid(x) == 0.5 * (tanh(x/2) + 1): single EUP op, no VALU divide.
    return 0.5 * (jnp.tanh(0.5 * x) + 1.0)


def _autoencoder_kernel(x_ref, w1_ref, b1_ref, w23_ref, b23_ref,
                        w4_ref, b4_ref, out_ref):
    """Forward pass for one (TILE_B, 784) batch tile. Weights are VMEM-resident."""
    x = x_ref[...]                                               # (TB, 784) f32

    # encoder Linear(784->128pad) + sigmoid
    h1 = _sigmoid(jnp.dot(x, w1_ref[...],
                          preferred_element_type=jnp.float32) + b1_ref[...])
    # fused bottleneck (100->2->100, exact since z has no activation) + sigmoid
    h2 = _sigmoid(jnp.dot(h1, w23_ref[...],
                          preferred_element_type=jnp.float32) + b23_ref[...])
    # decoder Linear(128pad->896pad), no final activation
    y = jnp.dot(h2, w4_ref[...],
                preferred_element_type=jnp.float32) + b4_ref[...]
    out_ref[...] = y.astype(out_ref.dtype)                       # (TB, 896)


def prepare_params(params, weights_dtype=jnp.float32):
    """Fuse the bottleneck and zero-pad everything to lane-aligned shapes."""
    w1, b1, w2, b2, w3, b3, w4, b4 = params

    # Exact fusion of Linear(100->2) ∘ Linear(2->100) (no activation between).
    w23 = w2 @ w3                         # (100, 100)
    b23 = b2 @ w3 + b3                    # (1, 100)

    w1p = jnp.zeros((IN_DIM, MID_P), jnp.float32).at[:, :MID].set(w1)
    b1p = jnp.zeros((1, MID_P), jnp.float32).at[:, :MID].set(b1)
    w23p = jnp.zeros((MID_P, MID_P), jnp.float32).at[:MID, :MID].set(w23)
    b23p = jnp.zeros((1, MID_P), jnp.float32).at[:, :MID].set(b23)
    w4p = jnp.zeros((MID_P, OUT_P), jnp.float32).at[:MID, :IN_DIM].set(w4)
    b4p = jnp.zeros((1, OUT_P), jnp.float32).at[:, :IN_DIM].set(b4)

    # Optionally store the two big (784x128 / 128x896) weights in bf16:
    # halves weight DMA + resident VMEM; accumulation stays f32 in the kernel.
    w1p = w1p.astype(weights_dtype)
    w4p = w4p.astype(weights_dtype)
    return w1p, b1p, w23p, b23p, w4p, b4p


def mnist_autoencoder_forward(x_nchw, params, *, tile_b=256,
                              weights_dtype=jnp.float32):
    """x_nchw: (B, 1, 28, 28) float32. Returns (B, 784) float32."""
    B = x_nchw.shape[0]
    x2d = x_nchw.reshape(B, -1).astype(jnp.float32)   # torch.flatten(start_dim=1)

    # Batch tile: multiple of 8 (sublane), capped at the rounded-up batch so
    # small batches don't allocate an oversized tile.
    tb = max(8, min(_round_up(tile_b, 8), _round_up(B, 8)))
    Bp = _round_up(B, tb)
    if Bp != B:
        x2d = jnp.pad(x2d, ((0, Bp - B), (0, 0)))     # padded rows sliced off below

    w1p, b1p, w23p, b23p, w4p, b4p = prepare_params(params, weights_dtype)

    # Constant index map -> block stays resident in VMEM across grid steps.
    resident = lambda shape: pl.BlockSpec(shape, lambda i: (0, 0))

    out = pl.pallas_call(
        _autoencoder_kernel,
        out_shape=jax.ShapeDtypeStruct((Bp, OUT_P), jnp.float32),
        grid_spec=pl.GridSpec(
            grid=(Bp // tb,),
            in_specs=[
                pl.BlockSpec((tb, IN_DIM), lambda i: (i, 0)),   # x: streamed
                resident((IN_DIM, MID_P)), resident((1, MID_P)),
                resident((MID_P, MID_P)), resident((1, MID_P)),
                resident((MID_P, OUT_P)), resident((1, OUT_P)),
            ],
            out_specs=pl.BlockSpec((tb, OUT_P), lambda i: (i, 0)),
        ),
        compiler_params=pltpu.CompilerParams(
            dimension_semantics=("parallel",)),
    )(x2d, w1p, b1p, w23p, b23p, w4p, b4p)

    return out[:B, :IN_DIM]


def init_params(key):
    """PyTorch-style init: U(-1/sqrt(fan_in), 1/sqrt(fan_in)).

    Weights stored as (in_features, out_features); biases as (1, out_features).
    """
    def linear(k, fan_in, fan_out):
        kw, kb = jax.random.split(k)
        bound = 1.0 / jnp.sqrt(fan_in)
        w = jax.random.uniform(kw, (fan_in, fan_out), jnp.float32, -bound, bound)
        b = jax.random.uniform(kb, (1, fan_out), jnp.float32, -bound, bound)
        return w, b

    k1, k2, k3, k4 = jax.random.split(key, 4)
    w1, b1 = linear(k1, IN_DIM, MID)          # encoder Linear(784, 100)
    w2, b2 = linear(k2, MID, BOTTLENECK)      # encoder Linear(100, 2)
    w3, b3 = linear(k3, BOTTLENECK, MID)      # decoder Linear(2, 100)
    w4, b4 = linear(k4, MID, IN_DIM)          # decoder Linear(100, 784)
    return (w1, b1, w2, b2, w3, b3, w4, b4)


def _reference(x_nchw, params):
    """Plain-JAX reference (unfused, unpadded) matching the PyTorch module."""
    (w1, b1, w2, b2, w3, b3, w4, b4) = params
    x = x_nchw.reshape(x_nchw.shape[0], -1)
    h1 = jax.nn.sigmoid(x @ w1 + b1)
    z = h1 @ w2 + b2
    h2 = jax.nn.sigmoid(z @ w3 + b3)
    return h2 @ w4 + b4


if __name__ == "__main__":
    key = jax.random.PRNGKey(0)
    k_params, k_input = jax.random.split(key)

    params = init_params(k_params)
    # MNIST-shaped NCHW input: (B, 1, 28, 28)
    x = jax.random.normal(k_input, (2, 1, 28, 28), dtype=jnp.float32)

    y_ref = _reference(x, params)

    # f32 weights: matches PyTorch-module numerics (fusion / padding / tanh
    # form only change rounding order).
    y = jax.block_until_ready(mnist_autoencoder_forward(x, params))
    assert y.shape == (2, IN_DIM), y.shape
    assert jnp.allclose(y, y_ref, atol=1e-4, rtol=1e-4), "f32 mismatch vs reference"

    # bf16-stored big weights (DMA/VMEM optimization), f32 accumulate.
    y16 = jax.block_until_ready(
        mnist_autoencoder_forward(x, params, weights_dtype=jnp.bfloat16))
    assert y16.shape == (2, IN_DIM), y16.shape
    assert jnp.allclose(y16, y_ref, atol=5e-2, rtol=5e-2), "bf16 mismatch vs reference"

    print("KERNEL_OK")
</pallas_src>

<mosaic_0001>
module attributes {stable_mosaic.version = 11 : i64} {
  func.func @_autoencoder_kernel(%arg0: i32, %arg1: memref<8x784xf32, #tpu.memory_space<vmem>>, %arg2: memref<784x128xf32, #tpu.memory_space<vmem>>, %arg3: memref<1x128xf32, #tpu.memory_space<vmem>>, %arg4: memref<128x128xf32, #tpu.memory_space<vmem>>, %arg5: memref<1x128xf32, #tpu.memory_space<vmem>>, %arg6: memref<128x896xf32, #tpu.memory_space<vmem>>, %arg7: memref<1x896xf32, #tpu.memory_space<vmem>>, %arg8: memref<8x896xf32, #tpu.memory_space<vmem>>) attributes {dimension_semantics = [#tpu.dimension_semantics<parallel>], iteration_bounds = array<i64: 1>, scalar_prefetch = 0 : i64, scratch_operands = 0 : i64, tpu.core_type = #tpu.core_type<tc>, window_params = [{transform_indices = @transform_0, window_bounds = array<i64: 8, 784>}, {pipeline_mode = #tpu.pipeline_mode<synchronous>, transform_indices = @transform_1, window_bounds = array<i64: 784, 128>}, {pipeline_mode = #tpu.pipeline_mode<synchronous>, transform_indices = @transform_2, window_bounds = array<i64: 1, 128>}, {pipeline_mode = #tpu.pipeline_mode<synchronous>, transform_indices = @transform_3, window_bounds = array<i64: 128, 128>}, {pipeline_mode = #tpu.pipeline_mode<synchronous>, transform_indices = @transform_4, window_bounds = array<i64: 1, 128>}, {pipeline_mode = #tpu.pipeline_mode<synchronous>, transform_indices = @transform_5, window_bounds = array<i64: 128, 896>}, {pipeline_mode = #tpu.pipeline_mode<synchronous>, transform_indices = @transform_6, window_bounds = array<i64: 1, 896>}, {transform_indices = @transform_7, window_bounds = array<i64: 8, 896>}]} {
    %c0 = arith.constant 0 : index
    %c0_0 = arith.constant 0 : index
    %0 = vector.load %arg1[%c0, %c0_0] : memref<8x784xf32, #tpu.memory_space<vmem>>, vector<8x784xf32>
    %c0_1 = arith.constant 0 : index
    %c0_2 = arith.constant 0 : index
    %1 = vector.load %arg2[%c0_1, %c0_2] : memref<784x128xf32, #tpu.memory_space<vmem>>, vector<784x128xf32>
    %cst = arith.constant dense<0.000000e+00> : vector<8x128xf32>
    %2 = tpu.matmul %0, %1, %cst {dimension_numbers = #tpu.dot_dimension_numbers<[1], [0], [0], [1], [0, 0, 1, 1], [], []>} : vector<8x784xf32>, vector<784x128xf32>, vector<8x128xf32> -> vector<8x128xf32>
    %c0_3 = arith.constant 0 : index
    %c0_4 = arith.constant 0 : index
    %3 = vector.load %arg3[%c0_3, %c0_4] : memref<1x128xf32, #tpu.memory_space<vmem>>, vector<1x128xf32>
    %4 = vector.broadcast %3 : vector<1x128xf32> to vector<8x128xf32>
    %5 = arith.addf %2, %4 : vector<8x128xf32>
    %cst_5 = arith.constant 5.000000e-01 : f32
    %6 = vector.broadcast %cst_5 : f32 to vector<8x128xf32>
    %7 = arith.mulf %6, %5 : vector<8x128xf32>
    %8 = math.tanh %7 : vector<8x128xf32>
    %cst_6 = arith.constant 1.000000e+00 : f32
    %9 = vector.broadcast %cst_6 : f32 to vector<8x128xf32>
    %10 = arith.addf %8, %9 : vector<8x128xf32>
    %cst_7 = arith.constant 5.000000e-01 : f32
    %11 = vector.broadcast %cst_7 : f32 to vector<8x128xf32>
    %12 = arith.mulf %11, %10 : vector<8x128xf32>
    %c0_8 = arith.constant 0 : index
    %c0_9 = arith.constant 0 : index
    %13 = vector.load %arg4[%c0_8, %c0_9] : memref<128x128xf32, #tpu.memory_space<vmem>>, vector<128x128xf32>
    %cst_10 = arith.constant dense<0.000000e+00> : vector<8x128xf32>
    %14 = tpu.matmul %12, %13, %cst_10 {dimension_numbers = #tpu.dot_dimension_numbers<[1], [0], [0], [1], [0, 0, 1, 1], [], []>} : vector<8x128xf32>, vector<128x128xf32>, vector<8x128xf32> -> vector<8x128xf32>
    %c0_11 = arith.constant 0 : index
    %c0_12 = arith.constant 0 : index
    %15 = vector.load %arg5[%c0_11, %c0_12] : memref<1x128xf32, #tpu.memory_space<vmem>>, vector<1x128xf32>
    %16 = vector.broadcast %15 : vector<1x128xf32> to vector<8x128xf32>
    %17 = arith.addf %14, %16 : vector<8x128xf32>
    %cst_13 = arith.constant 5.000000e-01 : f32
    %18 = vector.broadcast %cst_13 : f32 to vector<8x128xf32>
    %19 = arith.mulf %18, %17 : vector<8x128xf32>
    %20 = math.tanh %19 : vector<8x128xf32>
    %cst_14 = arith.constant 1.000000e+00 : f32
    %21 = vector.broadcast %cst_14 : f32 to vector<8x128xf32>
    %22 = arith.addf %20, %21 : vector<8x128xf32>
    %cst_15 = arith.constant 5.000000e-01 : f32
    %23 = vector.broadcast %cst_15 : f32 to vector<8x128xf32>
    %24 = arith.mulf %23, %22 : vector<8x128xf32>
    %c0_16 = arith.constant 0 : index
    %c0_17 = arith.constant 0 : index
    %25 = vector.load %arg6[%c0_16, %c0_17] : memref<128x896xf32, #tpu.memory_space<vmem>>, vector<128x896xf32>
    %cst_18 = arith.constant dense<0.000000e+00> : vector<8x896xf32>
    %26 = tpu.matmul %24, %25, %cst_18 {dimension_numbers = #tpu.dot_dimension_numbers<[1], [0], [0], [1], [0, 0, 1, 1], [], []>} : vector<8x128xf32>, vector<128x896xf32>, vector<8x896xf32> -> vector<8x896xf32>
    %c0_19 = arith.constant 0 : index
    %c0_20 = arith.constant 0 : index
    %27 = vector.load %arg7[%c0_19, %c0_20] : memref<1x896xf32, #tpu.memory_space<vmem>>, vector<1x896xf32>
    %28 = vector.broadcast %27 : vector<1x896xf32> to vector<8x896xf32>
    %29 = arith.addf %26, %28 : vector<8x896xf32>
    %c0_21 = arith.constant 0 : index
    %c0_22 = arith.constant 0 : index
    %30 = vector.load %arg8[%c0_21, %c0_22] : memref<8x896xf32, #tpu.memory_space<vmem>>, vector<8x896xf32>
    tpu.vector_store %arg8[%c0_21, %c0_22], %29 {strides = array<i32>} : memref<8x896xf32, #tpu.memory_space<vmem>>, vector<8x896xf32>,
    return
  }
  func.func @transform_0(%arg0: i32) -> (i32, i32) {
    %c0_i32 = arith.constant 0 : i32
    %c0_i32_0 = arith.constant 0 : i32
    return %arg0, %c0_i32 : i32, i32
  }
  func.func @transform_1(%arg0: i32) -> (i32, i32) {
    %c0_i32 = arith.constant 0 : i32
    %c0_i32_0 = arith.constant 0 : i32
    %c0_i32_1 = arith.constant 0 : i32
    return %c0_i32, %c0_i32_0 : i32, i32
  }
  func.func @transform_2(%arg0: i32) -> (i32, i32) {
    %c0_i32 = arith.constant 0 : i32
    %c0_i32_0 = arith.constant 0 : i32
    %c0_i32_1 = arith.constant 0 : i32
    return %c0_i32, %c0_i32_0 : i32, i32
  }
  func.func @transform_3(%arg0: i32) -> (i32, i32) {
    %c0_i32 = arith.constant 0 : i32
    %c0_i32_0 = arith.constant 0 : i32
    %c0_i32_1 = arith.constant 0 : i32
    return %c0_i32, %c0_i32_0 : i32, i32
  }
  func.func @transform_4(%arg0: i32) -> (i32, i32) {
    %c0_i32 = arith.constant 0 : i32
    %c0_i32_0 = arith.constant 0 : i32
    %c0_i32_1 = arith.constant 0 : i32
    return %c0_i32, %c0_i32_0 : i32, i32
  }
  func.func @transform_5(%arg0: i32) -> (i32, i32) {
    %c0_i32 = arith.constant 0 : i32
    %c0_i32_0 = arith.constant 0 : i32
    %c0_i32_1 = arith.constant 0 : i32
    return %c0_i32, %c0_i32_0 : i32, i32
  }
  func.func @transform_6(%arg0: i32) -> (i32, i32) {
    %c0_i32 = arith.constant 0 : i32
    %c0_i32_0 = arith.constant 0 : i32
    %c0_i32_1 = arith.constant 0 : i32
    return %c0_i32, %c0_i32_0 : i32, i32
  }
  func.func @transform_7(%arg0: i32) -> (i32, i32) {
    %c0_i32 = arith.constant 0 : i32
    %c0_i32_0 = arith.constant 0 : i32
    return %arg0, %c0_i32 : i32, i32
  }
}

</mosaic_0001>

<bundles_post_ra>
// kernel: tpu_custom_call.1
= control target key start
LH: loop header
LB: loop body
LE: loop exit
PB: predicated region body
PF: predicated region fallthrough
CT: control target
= control target key end

     0   :  { %12 = vsyncpa [#allocation3], 0  ;;  %s1791_s0 = inlined_call_operand.hbm [shape: f32[8,784], index: 0, kind: input, shape index: {}]   ;;  %s1792_s1 = inlined_call_operand.hbm [shape: f32[784,128], index: 1, kind: input, shape index: {}]   ;;  %s1793_s2 = inlined_call_operand.vmem [shape: f32[1,128], index: 2, kind: input, shape index: {}]   ;;  %s1794_s3 = inlined_call_operand.hbm [shape: f32[128,128], index: 3, kind: input, shape index: {}]   ;;  %s1795_s4 = inlined_call_operand.vmem [shape: f32[1,128], index: 4, kind: input, shape index: {}]   ;;  %s1796_s5 = inlined_call_operand.hbm [shape: f32[128,896], index: 5, kind: input, shape index: {}]   ;;  %s1797_s6 = inlined_call_operand.vmem [shape: f32[1,896], index: 6, kind: input, shape index: {}]   ;;  %s1798_s7 = inlined_call_operand.hbm [shape: f32[8,896], index: 7, kind: output, shape index: {}]  }
   0x1   :  { %13 = vsyncpa [#allocation6], 0 }
   0x2   :  { %14 = vsyncpa [#allocation9], 0 }
   0x3   :  { %15 = vsyncpa [#allocation4], 0  ;;  %s1632_s24 = smov [#allocation5]   ;;  %s1514_s28 = scalar_lea.hbm %s1792_s1, 12544 }
   0x4   :  { %s31_s25 = sshll.u32 %s1632_s24, 4  ;;  %p1515_p0 = scmp.ne.s32.totalorder %s1792_s1, %s1514_s28  ;;  %s32_s25 = int_to_ptr.vmem [resolvable:$true] %s31_s25 }
   0x5   :  { %p1518_p1 = scmp.lt.u32.totalorder %s1514_s28, %s1792_s1 }
   0x7   :  { %p1520_p2 = pnand %p1518_p1, %p1515_p0 }
   0x9   :  { %1523 = shalt.err (!%p1520_p2)
}
   0xa   :  { %s1524_s10 = scalar_lea.vmem %s32_s25, 12544  ;;  %p1529_p4 = scmp.lt.s32.totalorder %s32_s25, %s32_s25 }
   0xb   :  { %p1525_p3 = scmp.ne.s32.totalorder %s32_s25, %s1524_s10  ;;  %p1530_p5 = scmp.lt.s32.totalorder %s1524_s10, %s1524_s10 }
   0xd   :  { %p1531_p6 = por %p1530_p5, %p1529_p4 }
   0xf   :  { %p1532_p7 = pnand %p1531_p6, %p1525_p3 }
  0x11   :  { %1535 = shalt.err (!%p1532_p7)
}
  0x12   :  { %s1633_s11 = smov 128   ;;  %s1634_s12 = smov 8  }
  0x13   :  { %37 = dma.hbm_to_vmem [thread:$0]  %s1792_s1, 12544, %s32_s25, [#allocation6], %s1633_s11, %s1633_s11, %s1634_s12  }
  0x14   :  { %s1635_s15 = smov [#allocation2]   ;;  %s1636_s17 = smov [#allocation7]  }
  0x15   :  { %s22_s16 = sshll.u32 %s1635_s15, 4  ;;  %s45_s18 = sshll.u32 %s1636_s17, 4  ;;  %s23_s16 = int_to_ptr.vmem [resolvable:$true] %s22_s16  ;;  %s46_s18 = int_to_ptr.vmem [resolvable:$true] %s45_s18 }
  0x16   :  { %s1536_s21 = scalar_lea.hbm %s1791_s0, 896 }
  0x17   :  { %p1537_p8 = scmp.ne.s32.totalorder %s1791_s0, %s1536_s21  ;;  %p1540_p9 = scmp.lt.u32.totalorder %s1536_s21, %s1791_s0 }
  0x19   :  { %p1542_p10 = pnand %p1540_p9, %p1537_p8 }
  0x1b   :  { %1545 = shalt.err (!%p1542_p10)
}
  0x1c   :  { %s1546_s1 = scalar_lea.vmem %s23_s16, 896  ;;  %p1551_p12 = scmp.lt.s32.totalorder %s23_s16, %s23_s16 }
  0x1d   :  { %p1547_p11 = scmp.ne.s32.totalorder %s23_s16, %s1546_s1  ;;  %p1552_p13 = scmp.lt.s32.totalorder %s1546_s1, %s1546_s1 }
  0x1f   :  { %p1553_p0 = por %p1552_p13, %p1551_p12 }
  0x21   :  { %p1554_p1 = pnand %p1553_p0, %p1547_p11 }
  0x23   :  { %1557 = shalt.err (!%p1554_p1)
}
  0x24   :  { %25 = dma.hbm_to_vmem [thread:$0]  %s1791_s0, 896, %s23_s16, [#allocation3]  }
  0x25   :  { %s1558_s30 = scalar_lea.hbm %s1794_s3, 2048 }
  0x26   :  { %p1559_p2 = scmp.ne.s32.totalorder %s1794_s3, %s1558_s30  ;;  %p1562_p3 = scmp.lt.u32.totalorder %s1558_s30, %s1794_s3 }
  0x28   :  { %p1564_p4 = pnand %p1562_p3, %p1559_p2 }
  0x2a   :  { %1567 = shalt.err (!%p1564_p4)
}
  0x2b   :  { %s1568_s14 = scalar_lea.vmem %s46_s18, 2048  ;;  %p1573_p6 = scmp.lt.s32.totalorder %s46_s18, %s46_s18 }
  0x2c   :  { %p1569_p5 = scmp.ne.s32.totalorder %s46_s18, %s1568_s14  ;;  %p1574_p7 = scmp.lt.s32.totalorder %s1568_s14, %s1568_s14 }
  0x2e   :  { %p1575_p8 = por %p1574_p7, %p1573_p6 }
  0x30   :  { %p1576_p9 = pnand %p1575_p8, %p1569_p5 }
  0x32   :  { %1579 = shalt.err (!%p1576_p9)
}
  0x33   :  { %51 = dma.hbm_to_vmem [thread:$0]  %s1794_s3, 2048, %s46_s18, [#allocation6], %s1633_s11, %s1633_s11, %s1634_s12  }
  0x34   :  { %s1637_s16 = smov [#allocation8]   ;;  %s1580_s21 = scalar_lea.hbm %s1796_s5, 14336 }
  0x35   :  { %s59_s17 = sshll.u32 %s1637_s16, 4  ;;  %p1581_p10 = scmp.ne.s32.totalorder %s1796_s5, %s1580_s21  ;;  %s60_s17 = int_to_ptr.vmem [resolvable:$true] %s59_s17 }
  0x36   :  { %p1584_p11 = scmp.lt.u32.totalorder %s1580_s21, %s1796_s5 }
  0x38   :  { %p1586_p12 = pnand %p1584_p11, %p1581_p10 }
  0x3a   :  { %1589 = shalt.err (!%p1586_p12)
}
  0x3b   :  { %s1590_s1 = scalar_lea.vmem %s60_s17, 14336  ;;  %p1595_p0 = scmp.lt.s32.totalorder %s60_s17, %s60_s17 }
  0x3c   :  { %p1591_p13 = scmp.ne.s32.totalorder %s60_s17, %s1590_s1  ;;  %p1596_p1 = scmp.lt.s32.totalorder %s1590_s1, %s1590_s1 }
  0x3e   :  { %p1597_p2 = por %p1596_p1, %p1595_p0 }
  0x40   :  { %p1598_p3 = pnand %p1597_p2, %p1591_p13 }
  0x42   :  { %1601 = shalt.err (!%p1598_p3)
}
  0x43   :  { %s1638_s3 = smov 896   ;;  %s1639_s11 = smov 56  }
  0x44   :  { %65 = dma.hbm_to_vmem [thread:$0]  %s1796_s5, 14336, %s60_s17, [#allocation9], %s1638_s3, %s1638_s3, %s1639_s11  }
  0x45   :  { %1624 = dma.done.wait [#allocation3], 896  }
  0x46   :  { %1625 = vsyncadd [#allocation3], 4294966400 }
  0x47   :  { %1626 = dma.done.wait [#allocation6], 14592  }
  0x48   :  { %1627 = vsyncadd [#allocation6], 4294952704 }
  0x49   :  { %1628 = dma.done.wait [#allocation9], 14336  }
  0x4a   :  { %1629 = vsyncadd [#allocation9], 4294952960  ;;  %v103_v0 = vld [vmem:[#allocation5 + $0x80] sm:$0xff]  ;;  %v104_v1 = vld [vmem:[#allocation5 + $0x88] sm:$0xff]  ;;  %vm1641_vm0 = vmmov 0   ;;  %vm192_vm1 = vcmask 130048  }
  0x4b   :  { %v87_v2 = vld [vmem:[#allocation5] sm:$0xff]  ;;  %v1255_v3 = vpack.c.bf16 %v104_v1, %v103_v0  ;;  %v88_v4 = vld [vmem:[#allocation5 + $0x8] sm:$0xff]  ;;  %v105_v11 = vld [vmem:[#allocation5 + $0x90] sm:$0xff] }
  0x4c   :  { %v135_v5 = vld [vmem:[#allocation5 + $0x180] sm:$0xff]  ;;  %v136_v6 = vld [vmem:[#allocation5 + $0x188] sm:$0xff]  ;;  %v1257_v7 = vpack.c.bf16 %v88_v4, %v87_v2  ;;  %v106_v13 = vld [vmem:[#allocation5 + $0x98] sm:$0xff] }
  0x4d   :  { %v1287_v8 = vpack.c.bf16 %v136_v6, %v135_v5  ;;  %v119_v9 = vld [vmem:[#allocation5 + $0x100] sm:$0xff]  ;;  %v120_v10 = vld [vmem:[#allocation5 + $0x108] sm:$0xff]  ;;  %1256 = vmatprep.subr.bf16.mxu0 %v1255_v3  ;;  %v89_v14 = vld [vmem:[#allocation5 + $0x10] sm:$0xff]  ;;  %v1259_v16 = vpack.c.bf16 %v106_v13, %v105_v11 }
  0x4e   :  { %v1289_v12 = vpack.c.bf16 %v120_v10, %v119_v9  ;;  %v90_v15 = vld [vmem:[#allocation5 + $0x18] sm:$0xff]  ;;  %1258 = vmatpush3.bf16.msra.mxu0 %v1257_v7  ;;  %v137_v18 = vld [vmem:[#allocation5 + $0x190] sm:$0xff]  ;;  %v107_v23 = vld [vmem:[#allocation5 + $0xa0] sm:$0xff] }
  0x4f   :  { %1288 = vmatprep.subr.bf16.mxu1 %v1287_v8  ;;  %v1261_v17 = vpack.c.bf16 %v90_v15, %v89_v14  ;;  %v138_v19 = vld [vmem:[#allocation5 + $0x198] sm:$0xff]  ;;  %v121_v20 = vld [vmem:[#allocation5 + $0x110] sm:$0xff]  ;;  %v108_v24 = vld [vmem:[#allocation5 + $0xa8] sm:$0xff]  ;;  %1260 = vmatprep.subr.bf16.mxu0 %v1259_v16 }
  0x50   :  { %1290 = vmatpush3.bf16.msra.mxu1 %v1289_v12  ;;  %v1291_v21 = vpack.c.bf16 %v138_v19, %v137_v18  ;;  %v122_v22 = vld [vmem:[#allocation5 + $0x118] sm:$0xff]  ;;  %v1263_v26 = vpack.c.bf16 %v108_v24, %v107_v23  ;;  %v91_v27 = vld [vmem:[#allocation5 + $0x20] sm:$0xff]  ;;  %v92_v28 = vld [vmem:[#allocation5 + $0x28] sm:$0xff] }
  0x51   :  { %v1293_v25 = vpack.c.bf16 %v122_v22, %v121_v20  ;;  %v139_v29 = vld [vmem:[#allocation5 + $0x1a0] sm:$0xff]  ;;  %v140_v30 = vld [vmem:[#allocation5 + $0x1a8] sm:$0xff]  ;;  %v1265_v33 = vpack.c.bf16 %v92_v28, %v91_v27  ;;  %v109_v35 = vld [vmem:[#allocation5 + $0xb0] sm:$0xff] }
  0x52   :  { %1292 = vmatprep.subr.bf16.mxu1 %v1291_v21  ;;  %v123_v31 = vld [vmem:[#allocation5 + $0x120] sm:$0xff]  ;;  %v124_v32 = vld [vmem:[#allocation5 + $0x128] sm:$0xff]  ;;  %1262 = vmatpush3.bf16.msra.mxu0 %v1261_v17  ;;  %v1295_v34 = vpack.c.bf16 %v140_v30, %v139_v29  ;;  %v110_v36 = vld [vmem:[#allocation5 + $0xb8] sm:$0xff] }
  0x53   :  { %v93_v37 = vld [vmem:[#allocation5 + $0x30] sm:$0xff]  ;;  %1264 = vmatprep.subr.bf16.mxu0 %v1263_v26  ;;  %v1297_v38 = vpack.c.bf16 %v124_v32, %v123_v31  ;;  %v1267_v39 = vpack.c.bf16 %v110_v36, %v109_v35  ;;  %v94_v40 = vld [vmem:[#allocation5 + $0x38] sm:$0xff]  ;;  %v111_v46 = vld [vmem:[#allocation5 + $0xc0] sm:$0xff] }
  0x54   :  { %1294 = vmatpush3.bf16.msra.mxu1 %v1293_v25  ;;  %v141_v41 = vld [vmem:[#allocation5 + $0x1b0] sm:$0xff]  ;;  %v142_v42 = vld [vmem:[#allocation5 + $0x1b8] sm:$0xff]  ;;  %v112_v47 = vld [vmem:[#allocation5 + $0xc8] sm:$0xff]  ;;  %v1269_v48 = vpack.c.bf16 %v94_v40, %v93_v37 }
  0x55   :  { %1296 = vmatprep.subr.bf16.mxu1 %v1295_v34  ;;  %v1299_v43 = vpack.c.bf16 %v142_v42, %v141_v41  ;;  %v125_v44 = vld [vmem:[#allocation5 + $0x130] sm:$0xff]  ;;  %v126_v45 = vld [vmem:[#allocation5 + $0x138] sm:$0xff]  ;;  %v143_v49 = vld [vmem:[#allocation5 + $0x1c0] sm:$0xff]  ;;  %v1271_v52 = vpack.c.bf16 %v112_v47, %v111_v46 }
  0x56   :  { %1266 = vmatpush3.bf16.msra.mxu0 %v1265_v33  ;;  %v144_v50 = vld [vmem:[#allocation5 + $0x1c8] sm:$0xff]  ;;  %v1301_v51 = vpack.c.bf16 %v126_v45, %v125_v44  ;;  %v95_v53 = vld [vmem:[#allocation5 + $0x40] sm:$0xff]  ;;  %v113_v58 = vld [vmem:[#allocation5 + $0xd0] sm:$0xff] }
  0x57   :  { %1268 = vmatprep.subr.bf16.mxu0 %v1267_v39  ;;  %v96_v54 = vld [vmem:[#allocation5 + $0x48] sm:$0xff]  ;;  %v127_v55 = vld [vmem:[#allocation5 + $0x140] sm:$0xff]  ;;  %v1303_v56 = vpack.c.bf16 %v144_v50, %v143_v49  ;;  %v114_v59 = vld [vmem:[#allocation5 + $0xd8] sm:$0xff]  ;;  %v1640_v50 = vmov 0.0|0.0  }
  0x58   :  { %1298 = vmatpush3.bf16.msra.mxu1 %v1297_v38  ;;  %v128_v57 = vld [vmem:[#allocation5 + $0x148] sm:$0xff]  ;;  %v145_v60 = vld [vmem:[#allocation5 + $0x1d0] sm:$0xff]  ;;  %v146_v61 = vld [vmem:[#allocation5 + $0x1d8] sm:$0xff]  ;;  %v1273_v62 = vpack.c.bf16 %v96_v54, %v95_v53  ;;  %v1275_v0 = vpack.c.bf16 %v114_v59, %v113_v58 }
  0x59   :  { %1300 = vmatprep.subr.bf16.mxu1 %v1299_v43  ;;  %v1305_v63 = vpack.c.bf16 %v128_v57, %v127_v55  ;;  %v97_v1 = vld [vmem:[#allocation5 + $0x50] sm:$0xff]  ;;  %v98_v2 = vld [vmem:[#allocation5 + $0x58] sm:$0xff]  ;;  %v1307_v4 = vpack.c.bf16 %v146_v61, %v145_v60  ;;  %v115_v6 = vld [vmem:[#allocation5 + $0xe0] sm:$0xff]  ;;  %v1642_v60 = vmov 0.0  }
  0x5a   :  { %1270 = vmatpush3.bf16.msra.mxu0 %v1269_v48  ;;  %v129_v3 = vld [vmem:[#allocation5 + $0x150] sm:$0xff]  ;;  %v130_v5 = vld [vmem:[#allocation5 + $0x158] sm:$0xff]  ;;  %v116_v7 = vld [vmem:[#allocation5 + $0xe8] sm:$0xff]  ;;  %v1277_v10 = vpack.c.bf16 %v98_v2, %v97_v1 }
  0x5b   :  { %1272 = vmatprep.subr.bf16.mxu0 %v1271_v52  ;;  %v147_v8 = vld [vmem:[#allocation5 + $0x1e0] sm:$0xff]  ;;  %v148_v9 = vld [vmem:[#allocation5 + $0x1e8] sm:$0xff]  ;;  %v81_v12 = vld [vmem:[#allocation2 + $0x8] sm:$0xff]  ;;  %v1309_v13 = vpack.c.bf16 %v130_v5, %v129_v3  ;;  %v1279_v14 = vpack.c.bf16 %v116_v7, %v115_v6 }
  0x5c   :  { %1302 = vmatpush3.bf16.msra.mxu1 %v1301_v51  ;;  %v99_v11 = vld [vmem:[#allocation5 + $0x60] sm:$0xff]  ;;  %v100_v15 = vld [vmem:[#allocation5 + $0x68] sm:$0xff]  ;;  %v1311_v18 = vpack.c.bf16 %v148_v9, %v147_v8  ;;  %v117_v19 = vld [vmem:[#allocation5 + $0xf0] sm:$0xff]  ;;  %260 = vmatprep.mubr.f32.mxu0 %v81_v12 }
  0x5d   :  { %1304 = vmatprep.subr.bf16.mxu1 %v1303_v56  ;;  %v131_v16 = vld [vmem:[#allocation5 + $0x160] sm:$0xff]  ;;  %v132_v17 = vld [vmem:[#allocation5 + $0x168] sm:$0xff]  ;;  %v118_v20 = vld [vmem:[#allocation5 + $0xf8] sm:$0xff]  ;;  %v1281_v24 = vpack.c.bf16 %v100_v15, %v99_v11 }
  0x5e   :  { %1274 = vmatpush3.bf16.msra.mxu0 %v1273_v62  ;;  %v83_v21 = vld [vmem:[#allocation2 + $0x18] sm:$0xff]  ;;  %v149_v22 = vld [vmem:[#allocation5 + $0x1f0] sm:$0xff]  ;;  %v150_v23 = vld [vmem:[#allocation5 + $0x1f8] sm:$0xff]  ;;  %v1313_v25 = vpack.c.bf16 %v132_v17, %v131_v16  ;;  %v1283_v26 = vpack.c.bf16 %v118_v20, %v117_v19 }
  0x5f   :  { %1276 = vmatprep.subr.bf16.mxu0 %v1275_v0  ;;  %330 = vmatprep.mubr.f32.mxu1 %v83_v21  ;;  %v101_v27 = vld [vmem:[#allocation5 + $0x70] sm:$0xff]  ;;  %v102_v28 = vld [vmem:[#allocation5 + $0x78] sm:$0xff]  ;;  %v1315_v30 = vpack.c.bf16 %v150_v23, %v149_v22  ;;  %v167_v32 = vld [vmem:[#allocation5 + $0x280] sm:$0xff] }
  0x60   :  { %1306 = vmatpush3.bf16.msra.mxu1 %v1305_v63  ;;  %v133_v29 = vld [vmem:[#allocation5 + $0x170] sm:$0xff]  ;;  %v134_v31 = vld [vmem:[#allocation5 + $0x178] sm:$0xff]  ;;  %v168_v33 = vld [vmem:[#allocation5 + $0x288] sm:$0xff]  ;;  %v1285_v34 = vpack.c.bf16 %v102_v28, %v101_v27 }
  0x61   :  { %1308 = vmatprep.subr.bf16.mxu1 %v1307_v4  ;;  %v1317_v35 = vpack.c.bf16 %v134_v31, %v133_v29  ;;  %v1319_v36 = vpack.c.bf16 %v168_v33, %v167_v32  ;;  %v151_v37 = vld [vmem:[#allocation5 + $0x200] sm:$0xff]  ;;  %v152_v38 = vld [vmem:[#allocation5 + $0x208] sm:$0xff]  ;;  %v169_v39 = vld [vmem:[#allocation5 + $0x290] sm:$0xff] }
  0x62   :  { %1278 = vmatpush3.bf16.msra.mxu0 %v1277_v10  ;;  %v170_v40 = vld [vmem:[#allocation5 + $0x298] sm:$0xff]  ;;  %v80_v41 = vld [vmem:[#allocation2] sm:$0xff]  ;;  %v1321_v42 = vpack.c.bf16 %v152_v38, %v151_v37  ;;  %v153_v44 = vld [vmem:[#allocation5 + $0x210] sm:$0xff] }
  0x63   :  { %1280 = vmatprep.subr.bf16.mxu0 %v1279_v14  ;;  %v82_v43 = vld [vmem:[#allocation2 + $0x10] sm:$0xff]  ;;  %v1323_v45 = vpack.c.bf16 %v170_v40, %v169_v39  ;;  %v171_v47 = vld [vmem:[#allocation5 + $0x2a0] sm:$0xff]  ;;  %v172_v48 = vld [vmem:[#allocation5 + $0x2a8] sm:$0xff] }
  0x64   :  { %1310 = vmatpush3.bf16.msra.mxu1 %v1309_v13  ;;  %v154_v46 = vld [vmem:[#allocation5 + $0x218] sm:$0xff]  ;;  %v85_v49 = vld [vmem:[#allocation2 + $0x28] sm:$0xff]  ;;  %v183_v51 = vld [vmem:[#allocation5 + $0x300] sm:$0xff]  ;;  %v1327_v55 = vpack.c.bf16 %v172_v48, %v171_v47 }
  0x65   :  { %1312 = vmatprep.subr.bf16.mxu1 %v1311_v18  ;;  %v184_v52 = vld [vmem:[#allocation5 + $0x308] sm:$0xff]  ;;  %v1325_v54 = vpack.c.bf16 %v154_v46, %v153_v44  ;;  %v155_v56 = vld [vmem:[#allocation5 + $0x220] sm:$0xff]  ;;  %v173_v58 = vld [vmem:[#allocation5 + $0x2b0] sm:$0xff] }
  0x66   :  { %1282 = vmatpush3.bf16.msra.mxu0 %v1281_v24  ;;  %v1352_v53 = vpack.c.bf16 %v184_v52, %v183_v51  ;;  %v156_v57 = vld [vmem:[#allocation5 + $0x228] sm:$0xff]  ;;  %v174_v59 = vld [vmem:[#allocation5 + $0x2b8] sm:$0xff]  ;;  %v157_v0 = vld [vmem:[#allocation5 + $0x230] sm:$0xff] }
  0x67   :  { %1284 = vmatprep.subr.bf16.mxu0 %v1283_v26  ;;  %v86_v61 = vld [vmem:[#allocation2 + $0x30] sm:$0xff]  ;;  %v1329_v62 = vpack.c.bf16 %v156_v57, %v155_v56  ;;  %v1331_v63 = vpack.c.bf16 %v174_v59, %v173_v58  ;;  %v175_v2 = vld [vmem:[#allocation5 + $0x2c0] sm:$0xff]  ;;  %v176_v3 = vld [vmem:[#allocation5 + $0x2c8] sm:$0xff] }
  0x68   :  { %1314 = vmatpush3.bf16.msra.mxu1 %v1313_v25  ;;  %v158_v1 = vld [vmem:[#allocation5 + $0x238] sm:$0xff]  ;;  %v1335_v5 = vpack.c.bf16 %v176_v3, %v175_v2  ;;  %v159_v6 = vld [vmem:[#allocation5 + $0x240] sm:$0xff]  ;;  %v160_v7 = vld [vmem:[#allocation5 + $0x248] sm:$0xff] }
  0x69   :  { %1316 = vmatprep.subr.bf16.mxu1 %v1315_v30  ;;  %v1333_v4 = vpack.c.bf16 %v158_v1, %v157_v0  ;;  %v177_v8 = vld [vmem:[#allocation5 + $0x2d0] sm:$0xff]  ;;  %v178_v9 = vld [vmem:[#allocation5 + $0x2d8] sm:$0xff]  ;;  %v1337_v10 = vpack.c.bf16 %v160_v7, %v159_v6  ;;  %v179_v14 = vld [vmem:[#allocation5 + $0x2e0] sm:$0xff] }
  0x6a   :  { %1286 = vmatpush3.bf16.msra.mxu0 %v1285_v34  ;;  %v1339_v11 = vpack.c.bf16 %v178_v9, %v177_v8  ;;  %v161_v12 = vld [vmem:[#allocation5 + $0x250] sm:$0xff]  ;;  %v162_v13 = vld [vmem:[#allocation5 + $0x258] sm:$0xff]  ;;  %v180_v15 = vld [vmem:[#allocation5 + $0x2e8] sm:$0xff] }
  0x6b   :  { %1320 = vmatprep.subr.bf16.mxu0 %v1319_v36  ;;  %v1341_v16 = vpack.c.bf16 %v162_v13, %v161_v12  ;;  %v1343_v17 = vpack.c.bf16 %v180_v15, %v179_v14  ;;  %v163_v18 = vld [vmem:[#allocation5 + $0x260] sm:$0xff]  ;;  %v164_v19 = vld [vmem:[#allocation5 + $0x268] sm:$0xff]  ;;  %v181_v20 = vld [vmem:[#allocation5 + $0x2f0] sm:$0xff] }
  0x6c   :  { %1318 = vmatpush3.bf16.msra.mxu1 %v1317_v35  ;;  %v182_v21 = vld [vmem:[#allocation5 + $0x2f8] sm:$0xff]  ;;  %v1345_v22 = vpack.c.bf16 %v164_v19, %v163_v18  ;;  %v165_v24 = vld [vmem:[#allocation5 + $0x270] sm:$0xff]  ;;  %v84_v27 = vld [vmem:[#allocation2 + $0x20] sm:$0xff] }
  0x6d   :  { %1351 = vmatprep.subr.bf16.mxu1 %v1640_v50  ;;  %261 = vmatmul.mubr.f32.vlgmr.msra.gmra.mrb[0].mxu0 %v80_v41  ;;  %v1347_v23 = vpack.c.bf16 %v182_v21, %v181_v20  ;;  %v166_v25 = vld [vmem:[#allocation5 + $0x278] sm:$0xff]  ;;  %v480_v28 = vld [vmem:[#allocation7] sm:$0xff]  ;;  %v482_v30 = vld [vmem:[#allocation7 + $0x10] sm:$0xff] }
  0x6e   :  { %1322 = vmatpush3.bf16.msra.mxu0 %v1321_v42  ;;  %400 = vmatprep.mubr.f32.mxu0 %v85_v49  ;;  %v1349_v26 = vpack.c.bf16 %v166_v25, %v165_v24  ;;  %v481_v29 = vld [vmem:[#allocation7 + $0x8] sm:$0xff]  ;;  %v483_v32 = vld [vmem:[#allocation7 + $0x18] sm:$0xff]  ;;  %v484_v34 = vld [vmem:[#allocation7 + $0x20] sm:$0xff] }
  0x6f   :  { %331 = vmatmul.mubr.f32.vlgmr.msra.gmra.mrb[0].mxu1 %v82_v43  ;;  %1324 = vmatprep.subr.bf16.mxu0 %v1323_v45  ;;  %v1355_v31 = vpack.c.bf16 %v481_v29, %v480_v28  ;;  %v1358_v33 = vpack.c.bf16 %v483_v32, %v482_v30  ;;  %v485_v35 = vld [vmem:[#allocation7 + $0x28] sm:$0xff]  ;;  %v486_v37 = vld [vmem:[#allocation7 + $0x30] sm:$0xff]  ;;  %v487_v38 = vld [vmem:[#allocation7 + $0x38] sm:$0xff] }
  0x70   :  { %1353 = vmatpush3.bf16.msra.mxu1 %v1352_v53  ;;  %1182 = vmatprep.mubr.msk.f32.mxu1 %vm1641_vm0, %v1642_v60  ;;  %v1361_v36 = vpack.c.bf16 %v485_v35, %v484_v34  ;;  %v1364_v39 = vpack.c.bf16 %v487_v38, %v486_v37  ;;  %v488_v40 = vld [vmem:[#allocation7 + $0x40] sm:$0xff]  ;;  %v489_v41 = vld [vmem:[#allocation7 + $0x48] sm:$0xff]  ;;  %v490_v43 = vld [vmem:[#allocation7 + $0x50] sm:$0xff] }
  0x71   :  { %1354 = vmatprep.subr.bf16.mxu1 %v1640_v50  ;;  %v1367_v42 = vpack.c.bf16 %v489_v41, %v488_v40  ;;  %v491_v44 = vld [vmem:[#allocation7 + $0x58] sm:$0xff]  ;;  %v492_v46 = vld [vmem:[#allocation7 + $0x60] sm:$0xff]  ;;  %v493_v47 = vld [vmem:[#allocation7 + $0x68] sm:$0xff] }
  0x72   :  { %1326 = vmatpush3.bf16.msra.mxu0 %v1325_v54  ;;  %v1370_v45 = vpack.c.bf16 %v491_v44, %v490_v43  ;;  %v1373_v48 = vpack.c.bf16 %v493_v47, %v492_v46  ;;  %v494_v49 = vld [vmem:[#allocation7 + $0x70] sm:$0xff]  ;;  %v495_v51 = vld [vmem:[#allocation7 + $0x78] sm:$0xff]  ;;  %v578_v53 = vld [vmem:[#allocation8 + $0x8] sm:$0xff] }
  0x73   :  { %1328 = vmatprep.subr.bf16.mxu0 %v1327_v55  ;;  %1183 = vmatmul.mubr.msk.f32.vlgmr.msra.gmra.mrb[2].mxu1 %vm192_vm1, %v86_v61  ;;  %v1376_v52 = vpack.c.bf16 %v495_v51, %v494_v49  ;;  %v585_v54 = vld [vmem:[#allocation8 + $0x40] sm:$0xff]  ;;  %v580_v55 = vld [vmem:[#allocation8 + $0x18] sm:$0xff]  ;;  %v587_v57 = vld [vmem:[#allocation8 + $0x50] sm:$0xff] }
  0x74   :  { %1217 = vmatprep.mubr.msk.f32.mxu1 %vm1641_vm0, %v1642_v60  ;;  %1356 = vmatpush3.bf16.msra.mxu1 %v1355_v31  ;;  %v1378_v56 = vpack.c.bf16 %v585_v54, %v578_v53  ;;  %v577_v58 = vld [vmem:[#allocation8] sm:$0xff]  ;;  %v584_v59 = vld [vmem:[#allocation8 + $0x38] sm:$0xff]  ;;  %v1410_v61 = vpack.c.bf16 %v587_v57, %v580_v55  ;;  %v599_v0 = vld [vmem:[#allocation8 + $0xb0] sm:$0xff] }
  0x75   :  { %1357 = vmatprep.subr.bf16.mxu1 %v1640_v50  ;;  %v591_v2 = vld [vmem:[#allocation8 + $0x70] sm:$0xff]  ;;  %v598_v3 = vld [vmem:[#allocation8 + $0xa8] sm:$0xff]  ;;  %v613_v6 = vld [vmem:[#allocation8 + $0x120] sm:$0xff] }
  0x76   :  { %1330 = vmatpush3.bf16.msra.mxu0 %v1329_v62  ;;  %v1380_v62 = vpack.c.bf16 %v584_v59, %v577_v58  ;;  %v605_v8 = vld [vmem:[#allocation8 + $0xe0] sm:$0xff]  ;;  %v612_v9 = vld [vmem:[#allocation8 + $0x118] sm:$0xff]  ;;  %v627_v12 = vld [vmem:[#allocation8 + $0x190] sm:$0xff] }
  0x77   :  { %1332 = vmatprep.subr.bf16.mxu0 %v1331_v63  ;;  %v592_v63 = vld [vmem:[#allocation8 + $0x78] sm:$0xff]  ;;  %v579_v31 = vld [vmem:[#allocation8 + $0x10] sm:$0xff]  ;;  %v586_v32 = vld [vmem:[#allocation8 + $0x48] sm:$0xff] }
  0x78   :  { %1359 = vmatpush3.bf16.msra.mxu1 %v1358_v33  ;;  %v1382_v1 = vpack.c.bf16 %v599_v0, %v592_v63  ;;  %v1033_v15 = vld [vmem:[%s1793_s2] ss:$0 sm:$0xff]  ;;  %v594_v34 = vld [vmem:[#allocation8 + $0x88] sm:$0xff]  ;;  %v601_v35 = vld [vmem:[#allocation8 + $0xc0] sm:$0xff]  ;;  %v1412_v37 = vpack.c.bf16 %v586_v32, %v579_v31 }
  0x79   :  { %1360 = vmatprep.subr.bf16.mxu1 %v1640_v50  ;;  %v593_v40 = vld [vmem:[#allocation8 + $0x80] sm:$0xff]  ;;  %v600_v41 = vld [vmem:[#allocation8 + $0xb8] sm:$0xff]  ;;  %v615_v43 = vld [vmem:[#allocation8 + $0x130] sm:$0xff] }
  0x7a   :  { %1334 = vmatpush3.bf16.msra.mxu0 %v1333_v4  ;;  %v1384_v4 = vpack.c.bf16 %v598_v3, %v591_v2  ;;  %v1416_v44 = vpack.c.bf16 %v600_v41, %v593_v40  ;;  %v607_v46 = vld [vmem:[#allocation8 + $0xf0] sm:$0xff]  ;;  %v614_v47 = vld [vmem:[#allocation8 + $0x128] sm:$0xff]  ;;  %v629_v49 = vld [vmem:[#allocation8 + $0x1a0] sm:$0xff] }
  0x7b   :  { %1336 = vmatprep.subr.bf16.mxu0 %v1335_v5  ;;  %v606_v5 = vld [vmem:[#allocation8 + $0xe8] sm:$0xff]  ;;  %v1420_v51 = vpack.c.bf16 %v614_v47, %v607_v46  ;;  %v619_v53 = vld [vmem:[#allocation8 + $0x150] sm:$0xff]  ;;  %v621_v55 = vld [vmem:[#allocation8 + $0x160] sm:$0xff] }
  0x7c   :  { %1362 = vmatpush3.bf16.msra.mxu1 %v1361_v36  ;;  %v1386_v7 = vpack.c.bf16 %v613_v6, %v606_v5  ;;  %v626_v54 = vld [vmem:[#allocation8 + $0x188] sm:$0xff]  ;;  %v628_v57 = vld [vmem:[#allocation8 + $0x198] sm:$0xff]  ;;  %v643_v0 = vld [vmem:[#allocation8 + $0x210] sm:$0xff] }
  0x7d   :  { %1363 = vmatprep.subr.bf16.mxu1 %v1640_v50  ;;  %v1424_v58 = vpack.c.bf16 %v628_v57, %v621_v55  ;;  %v634_v59 = vld [vmem:[#allocation8 + $0x1c8] sm:$0xff]  ;;  %v640_v2 = vld [vmem:[#allocation8 + $0x1f8] sm:$0xff]  ;;  %v635_v5 = vld [vmem:[#allocation8 + $0x1d0] sm:$0xff] }
  0x7e   :  { %1338 = vmatpush3.bf16.msra.mxu0 %v1337_v10  ;;  %v1388_v10 = vpack.c.bf16 %v612_v9, %v605_v8  ;;  %v642_v6 = vld [vmem:[#allocation8 + $0x208] sm:$0xff]  ;;  %v648_v8 = vld [vmem:[#allocation8 + $0x238] sm:$0xff]  ;;  %v655_v9 = vld [vmem:[#allocation8 + $0x270] sm:$0xff] }
  0x7f   :  { %1340 = vmatprep.subr.bf16.mxu0 %v1339_v11  ;;  %v620_v11 = vld [vmem:[#allocation8 + $0x158] sm:$0xff]  ;;  %v677_v41 = vld [vmem:[#allocation8 + $0x320] sm:$0xff]  ;;  %v583_v55 = vld [vmem:[#allocation8 + $0x30] sm:$0xff] }
  0x80   :  { %1365 = vmatpush3.bf16.msra.mxu1 %v1364_v39  ;;  %v1390_v13 = vpack.c.bf16 %v627_v12, %v620_v11  ;;  %v1414_v39 = vpack.c.bf16 %v601_v35, %v594_v34  ;;  %v1398_v11 = vpack.c.bf16 %v655_v9, %v648_v8  ;;  %v657_v12 = vld [vmem:[#allocation8 + $0x280] sm:$0xff]  ;;  %v676_v32 = vld [vmem:[#allocation8 + $0x318] sm:$0xff]  ;;  %v678_v34 = vld [vmem:[#allocation8 + $0x328] sm:$0xff] }
  0x81   :  { %1366 = vmatprep.subr.bf16.mxu1 %v1640_v50  ;;  %v1035_v47 = vld [vmem:[%s1795_s4] ss:$0 sm:$0xff] }
  0x82   :  { %1342 = vmatpush3.bf16.msra.mxu0 %v1341_v16 }
  0x83   :  { %1344 = vmatprep.subr.bf16.mxu0 %v1343_v17 }
  0x84   :  { %1368 = vmatpush3.bf16.msra.mxu1 %v1367_v42  ;;  %v608_v42 = vld [vmem:[#allocation8 + $0xf8] sm:$0xff] }
  0x85   :  { %1369 = vmatprep.subr.bf16.mxu1 %v1640_v50 }
  0x86   :  { %1346 = vmatpush3.bf16.msra.mxu0 %v1345_v22 }
  0x87   :  { %1348 = vmatprep.subr.bf16.mxu0 %v1347_v23 }
  0x88   :  { %1371 = vmatpush3.bf16.msra.mxu1 %v1370_v45  ;;  %v1418_v45 = vpack.c.bf16 %v615_v43, %v608_v42  ;;  %v684_v42 = vld [vmem:[#allocation8 + $0x358] sm:$0xff] }
  0x89   :  { %1372 = vmatprep.subr.bf16.mxu1 %v1640_v50  ;;  %v1440_v43 = vpack.c.bf16 %v684_v42, %v677_v41  ;;  %v666_v41 = vld [vmem:[#allocation8 + $0x2c8] sm:$0xff]  ;;  %v673_v42 = vld [vmem:[#allocation8 + $0x300] sm:$0xff] }
  0x8a   :  { %1350 = vmatpush3.bf16.msra.mxu0 %v1349_v26 }
  0x8b   :  { %1379 = vmatprep.subr.bf16.mxu0 %v1378_v56  ;;  %v1392_v56 = vpack.c.bf16 %v626_v54, %v619_v53  ;;  %v581_v53 = vld [vmem:[#allocation8 + $0x20] sm:$0xff]  ;;  %v588_v54 = vld [vmem:[#allocation8 + $0x58] sm:$0xff] }
  0x8c   :  { %1374 = vmatpush3.bf16.msra.mxu1 %v1373_v48  ;;  %v622_v48 = vld [vmem:[#allocation8 + $0x168] sm:$0xff] }
  0x8d   :  { %401 = vmatmul.mubr.f32.vlgmr.msra.gmra.mrb[2].mxu0 %v84_v27  ;;  %1375 = vmatprep.subr.bf16.mxu1 %v1640_v50 }
  0x8e   :  { %790 = vmatprep.mubr.f32.mxu0 %v1642_v60  ;;  %1381 = vmatpush1.bf16.msra.mxu0 %v1380_v62  ;;  %v636_v62 = vld [vmem:[#allocation8 + $0x1d8] sm:$0xff] }
  0x8f   :  { %1383 = vmatprep.subr.bf16.mxu0 %v1382_v1  ;;  %v633_v1 = vld [vmem:[#allocation8 + $0x1c0] sm:$0xff]  ;;  %v1426_v3 = vpack.c.bf16 %v643_v0, %v636_v62  ;;  %v1444_v62 = vpack.c.bf16 %v588_v54, %v581_v53  ;;  %v595_v0 = vld [vmem:[#allocation8 + $0x90] sm:$0xff] }
  0x90   :  { %1377 = vmatpush3.bf16.msra.mxu1 %v1376_v52  ;;  %v1422_v52 = vpack.c.bf16 %v629_v49, %v622_v48 }
  0x91   :  { %1411 = vmatprep.subr.bf16.mxu1 %v1410_v61  ;;  %v641_v61 = vld [vmem:[#allocation8 + $0x200] sm:$0xff] }
  0x92   :  { %1385 = vmatpush1.bf16.msra.mxu0 %v1384_v4  ;;  %v1394_v63 = vpack.c.bf16 %v641_v61, %v634_v59  ;;  %v1396_v4 = vpack.c.bf16 %v640_v2, %v633_v1  ;;  %v603_v59 = vld [vmem:[#allocation8 + $0xd0] sm:$0xff] }
  0x93   :  { %1387 = vmatprep.subr.bf16.mxu0 %v1386_v7  ;;  %v1428_v7 = vpack.c.bf16 %v642_v6, %v635_v5  ;;  %v604_v5 = vld [vmem:[#allocation8 + $0xd8] sm:$0xff]  ;;  %v610_v6 = vld [vmem:[#allocation8 + $0x108] sm:$0xff] }
  0x96   :  { %1389 = vmatpush1.bf16.msra.mxu0 %v1388_v10  ;;  %v650_v10 = vld [vmem:[#allocation8 + $0x248] sm:$0xff] }
  0x97   :  { %1391 = vmatprep.subr.bf16.mxu0 %v1390_v13  ;;  %v647_v13 = vld [vmem:[#allocation8 + $0x230] sm:$0xff] }
  0x9a   :  { %1393 = vmatpush1.bf16.msra.mxu0 %v1392_v56  ;;  %v590_v56 = vld [vmem:[#allocation8 + $0x68] sm:$0xff] }
  0x9b   :  { %1395 = vmatprep.subr.bf16.mxu0 %v1394_v63  ;;  %v1475_v63 = vpack.c.bf16 %v590_v56, %v583_v55  ;;  %v679_v55 = vld [vmem:[#allocation8 + $0x330] sm:$0xff] }
  0x9e   :  { %1397 = vmatpush1.bf16.msra.mxu0 %v1396_v4  ;;  %v597_v4 = vld [vmem:[#allocation8 + $0xa0] sm:$0xff] }
  0x9f   :  { %1399 = vmatprep.subr.bf16.mxu0 %v1398_v11  ;;  %v1478_v9 = vpack.c.bf16 %v604_v5, %v597_v4  ;;  %v689_v4 = vld [vmem:[%s1797_s6] sm:$0xff]  ;;  %s1643_s6 = smov [#allocation10]  }
  0xa0   :  { %s1022_s29 = sshll.u32 %s1643_s6, 4  ;;  %s1023_s29 = int_to_ptr.vmem [resolvable:$true] %s1022_s29 }
  0xa1   :  { %s1602_s30 = scalar_lea.vmem %s1023_s29, 896  ;;  %p1607_p5 = scmp.lt.s32.totalorder %s1023_s29, %s1023_s29 }
  0xa2   :  { %p1603_p4 = scmp.ne.s32.totalorder %s1023_s29, %s1602_s30  ;;  %p1608_p6 = scmp.lt.s32.totalorder %s1602_s30, %s1602_s30 }
  0xa4   :  { %p1609_p7 = por %p1608_p6, %p1607_p5 }
  0xa6   :  { %p1610_p8 = pnand %p1609_p7, %p1603_p4 }
 0x140   :  { %v1068_v14 = vpop.f32.mrb[0].mxu0 }
 0x141   :  { %v1069_v16 = vpop.f32.mrb[1].mxu0 }
 0x142   :  { %v1103_v17 = vpop.f32.mrb[0].mxu1  ;;  %v1070_v18 = vadd.f32 %v1069_v16, %v1068_v14  ;;  %v654_v14 = vld [vmem:[#allocation8 + $0x268] sm:$0xff] }
 0x143   :  { %v1104_v19 = vpop.f32.mrb[1].mxu1  ;;  %v1400_v16 = vpack.c.bf16 %v654_v14, %v647_v13  ;;  %v611_v13 = vld [vmem:[#allocation8 + $0x110] sm:$0xff]  ;;  %v618_v14 = vld [vmem:[#allocation8 + $0x148] sm:$0xff] }
 0x144   :  { %v1105_v20 = vadd.f32 %v1104_v19, %v1103_v17  ;;  %v263_v21 = vadd.f32 %v1070_v18, %v1033_v15  ;;  %v1430_v15 = vpack.c.bf16 %v657_v12, %v650_v10  ;;  %v649_v17 = vld [vmem:[#allocation8 + $0x240] sm:$0xff]  ;;  %v656_v18 = vld [vmem:[#allocation8 + $0x278] sm:$0xff] }
 0x145   :  { %v1432_v19 = vpack.c.bf16 %v656_v18, %v649_v17  ;;  %1401 = vmatpush1.bf16.msra.mxu0 %v1400_v16  ;;  %v609_v10 = vld [vmem:[#allocation8 + $0x100] sm:$0xff]  ;;  %v616_v12 = vld [vmem:[#allocation8 + $0x138] sm:$0xff]  ;;  %v631_v16 = vld [vmem:[#allocation8 + $0x1b0] sm:$0xff]  ;;  %v1481_v18 = vpack.c.bf16 %v618_v14, %v611_v13 }
 0x146   :  { %v333_v22 = vadd.f32 %v1105_v20, %v263_v21  ;;  %v472_v23 = vpop.f32.mrb[2].mxu1  ;;  %v662_v20 = vld [vmem:[#allocation8 + $0x2a8] sm:$0xff]  ;;  %v669_v21 = vld [vmem:[#allocation8 + $0x2e0] sm:$0xff]  ;;  %v1452_v17 = vpack.c.bf16 %v616_v12, %v609_v10 }
 0x147   :  { %v1184_v24 = vpop.f32.mrb[3].mxu1 }
 0x148   :  { %v671_v24 = vld [vmem:[#allocation8 + $0x2f0] sm:$0xff] }
 0x160   :  { %v1138_v25 = vpop.f32.mrb[2].mxu0 }
 0x161   :  { %v1139_v26 = vpop.f32.mrb[3].mxu0 }
 0x162   :  { %v1140_v27 = vadd.f32 %v1139_v26, %v1138_v25  ;;  %v661_v25 = vld [vmem:[#allocation8 + $0x2a0] sm:$0xff]  ;;  %v668_v26 = vld [vmem:[#allocation8 + $0x2d8] sm:$0xff] }
 0x164   :  { %v403_v28 = vadd.f32 %v1140_v27, %v333_v22  ;;  %v664_v22 = vld [vmem:[#allocation8 + $0x2b8] sm:$0xff] }
 0x165   :  { %v1434_v27 = vpack.c.bf16 %v671_v24, %v664_v22  ;;  %v625_v22 = vld [vmem:[#allocation8 + $0x180] sm:$0xff]  ;;  %v638_v24 = vld [vmem:[#allocation8 + $0x1e8] sm:$0xff] }
 0x166   :  { %v473_v29 = vadd.f32 %v472_v23, %v403_v28  ;;  %v1402_v23 = vpack.c.bf16 %v669_v21, %v662_v20  ;;  %v1404_v28 = vpack.c.bf16 %v668_v26, %v661_v25  ;;  %v630_v21 = vld [vmem:[#allocation8 + $0x1a8] sm:$0xff]  ;;  %v645_v25 = vld [vmem:[#allocation8 + $0x220] sm:$0xff] }
 0x168   :  { %v476_v30 = vmul.f32 0.5, %v473_v29  ;;  %v663_v29 = vld [vmem:[#allocation8 + $0x2b0] sm:$0xff]  ;;  %1403 = vmatprep.subr.bf16.mxu0 %v1402_v23  ;;  %v632_v23 = vld [vmem:[#allocation8 + $0x1b8] sm:$0xff] }
 0x169   :  { %1405 = vmatpush1.bf16.msra.mxu0 %v1404_v28  ;;  %v637_v28 = vld [vmem:[#allocation8 + $0x1e0] sm:$0xff] }
 0x16a   :  { %1510 = vtanh.f32 %v476_v30  ;;  %v670_v30 = vld [vmem:[#allocation8 + $0x2e8] sm:$0xff] }
 0x16b   :  { %v1436_v31 = vpack.c.bf16 %v670_v30, %v663_v29  ;;  %v644_v29 = vld [vmem:[#allocation8 + $0x218] sm:$0xff]  ;;  %v639_v30 = vld [vmem:[#allocation8 + $0x1f0] sm:$0xff] }
 0x174   :  { %v1511_v33 = vpop.eup %1510 }
 0x175   :  { %v478_v36 = vadd.f32 1.0, %v1511_v33  ;;  %v683_v33 = vld [vmem:[#allocation8 + $0x350] sm:$0xff] }
 0x176   :  { %v1406_v35 = vpack.c.bf16 %v683_v33, %v676_v32  ;;  %v652_v32 = vld [vmem:[#allocation8 + $0x258] sm:$0xff]  ;;  %v659_v33 = vld [vmem:[#allocation8 + $0x290] sm:$0xff] }
 0x177   :  { %v479_v38 = vmul.f32 0.5, %v478_v36  ;;  %v685_v36 = vld [vmem:[#allocation8 + $0x360] sm:$0xff] }
 0x178   :  { %1407 = vmatprep.subr.bf16.mxu0 %v1406_v35 }
 0x179   :  { %1218 = vmatmul.mubr.f32.vlgmr.msra.gmra.mrb[4].mxu1 %v479_v38  ;;  %v682_v38 = vld [vmem:[#allocation8 + $0x348] sm:$0xff] }
 0x17a   :  { %1413 = vmatpush1.bf16.msra.mxu1 %v1412_v37  ;;  %861 = vmatprep.mubr.f32.mxu1 %v1642_v60  ;;  %v675_v37 = vld [vmem:[#allocation8 + $0x310] sm:$0xff] }
 0x17b   :  { %1415 = vmatprep.subr.bf16.mxu1 %v1414_v39  ;;  %v1438_v39 = vpack.c.bf16 %v685_v36, %v678_v34  ;;  %v1408_v40 = vpack.c.bf16 %v682_v38, %v675_v37  ;;  %v1460_v34 = vpack.c.bf16 %v644_v29, %v637_v28  ;;  %v651_v36 = vld [vmem:[#allocation8 + $0x250] sm:$0xff]  ;;  %v1462_v37 = vpack.c.bf16 %v659_v33, %v652_v32  ;;  %v658_v38 = vld [vmem:[#allocation8 + $0x288] sm:$0xff] }
 0x17d   :  { %1409 = vmatpush1.bf16.msra.mxu0 %v1408_v40  ;;  %v660_v40 = vld [vmem:[#allocation8 + $0x298] sm:$0xff] }
 0x17e   :  { %1417 = vmatpush1.bf16.msra.mxu1 %v1416_v44  ;;  %v582_v44 = vld [vmem:[#allocation8 + $0x28] sm:$0xff] }
 0x17f   :  { %1419 = vmatprep.subr.bf16.mxu1 %v1418_v45  ;;  %v589_v45 = vld [vmem:[#allocation8 + $0x60] sm:$0xff] }
 0x180   :  { %v1442_v46 = vpack.c.bf16 %v589_v45, %v582_v44  ;;  %v665_v45 = vld [vmem:[#allocation8 + $0x2c0] sm:$0xff] }
 0x182   :  { %1421 = vmatpush1.bf16.msra.mxu1 %v1420_v51  ;;  %1443 = vmatprep.subr.bf16.mxu0 %v1442_v46  ;;  %v1466_v46 = vpack.c.bf16 %v673_v42, %v666_v41 }
 0x183   :  { %1423 = vmatprep.subr.bf16.mxu1 %v1422_v52 }
 0x186   :  { %1425 = vmatpush1.bf16.msra.mxu1 %v1424_v58  ;;  %v596_v58 = vld [vmem:[#allocation8 + $0x98] sm:$0xff] }
 0x187   :  { %1427 = vmatprep.subr.bf16.mxu1 %v1426_v3  ;;  %v1446_v2 = vpack.c.bf16 %v603_v59, %v596_v58  ;;  %v602_v3 = vld [vmem:[#allocation8 + $0xc8] sm:$0xff]  ;;  %v681_v58 = vld [vmem:[#allocation8 + $0x340] sm:$0xff]  ;;  %v688_v59 = vld [vmem:[#allocation8 + $0x378] sm:$0xff] }
 0x188   :  { %v1448_v8 = vpack.c.bf16 %v602_v3, %v595_v0 }
 0x18a   :  { %1429 = vmatpush1.bf16.msra.mxu1 %v1428_v7  ;;  %v617_v7 = vld [vmem:[#allocation8 + $0x140] sm:$0xff] }
 0x18b   :  { %1431 = vmatprep.subr.bf16.mxu1 %v1430_v15  ;;  %v1450_v11 = vpack.c.bf16 %v617_v7, %v610_v6  ;;  %v624_v15 = vld [vmem:[#allocation8 + $0x178] sm:$0xff] }
 0x18c   :  { %v1454_v20 = vpack.c.bf16 %v631_v16, %v624_v15 }
 0x18e   :  { %1433 = vmatpush1.bf16.msra.mxu1 %v1432_v19  ;;  %v623_v19 = vld [vmem:[#allocation8 + $0x170] sm:$0xff] }
 0x18f   :  { %1435 = vmatprep.subr.bf16.mxu1 %v1434_v27  ;;  %v1456_v26 = vpack.c.bf16 %v630_v21, %v623_v19  ;;  %v1484_v27 = vpack.c.bf16 %v632_v23, %v625_v22 }
 0x192   :  { %1437 = vmatpush1.bf16.msra.mxu1 %v1436_v31  ;;  %v646_v31 = vld [vmem:[#allocation8 + $0x228] sm:$0xff] }
 0x193   :  { %1439 = vmatprep.subr.bf16.mxu1 %v1438_v39  ;;  %v1487_v35 = vpack.c.bf16 %v646_v31, %v639_v30  ;;  %v653_v39 = vld [vmem:[#allocation8 + $0x260] sm:$0xff] }
 0x194   :  { %v1490_v44 = vpack.c.bf16 %v660_v40, %v653_v39 }
 0x196   :  { %1441 = vmatpush1.bf16.msra.mxu1 %v1440_v43  ;;  %v1464_v43 = vpack.c.bf16 %v658_v38, %v651_v36 }
 0x197   :  { %1474 = vmatprep.subr.bf16.mxu1 %v1640_v50 }
 0x24c   :  { %v569_v48 = vpop.f32.mrb[4].mxu1 }
 0x24d   :  { %v570_v49 = vadd.f32 %v1035_v47, %v569_v48  ;;  %v1219_v51 = vpop.f32.mrb[5].mxu1  ;;  %v672_v47 = vld [vmem:[#allocation8 + $0x2f8] sm:$0xff]  ;;  %v667_v48 = vld [vmem:[#allocation8 + $0x2d0] sm:$0xff] }
 0x24e   :  { %v680_v51 = vld [vmem:[#allocation8 + $0x338] sm:$0xff]  ;;  %v1468_v53 = vpack.c.bf16 %v672_v47, %v665_v45 }
 0x24f   :  { %v573_v52 = vmul.f32 0.5, %v570_v49  ;;  %v674_v49 = vld [vmem:[#allocation8 + $0x308] sm:$0xff] }
 0x250   :  { %v1493_v54 = vpack.c.bf16 %v674_v49, %v667_v48 }
 0x251   :  { %1512 = vtanh.f32 %v573_v52  ;;  %v687_v52 = vld [vmem:[#allocation8 + $0x370] sm:$0xff] }
 0x252   :  { %v1470_v56 = vpack.c.bf16 %v687_v52, %v680_v51 }
 0x25b   :  { %v1513_v57 = vpop.eup %1512 }
 0x25c   :  { %v575_v61 = vadd.f32 1.0, %v1513_v57  ;;  %v686_v57 = vld [vmem:[#allocation8 + $0x368] sm:$0xff] }
 0x25e   :  { %v1760_v1 = vmul.f32 0.5, %v575_v61  ;;  %v1472_v61 = vpack.c.bf16 %v686_v57, %v679_v55 }
 0x260   :  { %791 = vmatmul.mubr.f32.vlgmr.msra.gmra.mrb[4].mxu0 %v1760_v1  ;;  %862 = vmatmul.mubr.f32.vlgmr.msra.gmra.mrb[6].mxu1 %v1760_v1 }
 0x261   :  { %1445 = vmatpush1.bf16.msra.mxu0 %v1444_v62  ;;  %1476 = vmatpush3.bf16.msra.mxu1 %v1475_v63  ;;  %v1496_v62 = vpack.c.bf16 %v688_v59, %v681_v58  ;;  %v691_v63 = vlaneseq }
 0x262   :  { %1447 = vmatprep.subr.bf16.mxu0 %v1446_v2  ;;  %1477 = vmatprep.subr.bf16.mxu1 %v1640_v50 }
 0x263   :  { %932 = vmatprep.mubr.f32.mxu0 %v1642_v60  ;;  %1252 = vmatprep.mubr.msk.f32.mxu1 %vm1641_vm0, %v1642_v60  ;;  %v1458_v60 = vpack.c.bf16 %v645_v25, %v638_v24  ;;  %v692_v0 = vshrl.u32 %v691_v63, 7 }
 0x265   :  { %1449 = vmatpush1.bf16.msra.mxu0 %v1448_v8  ;;  %1479 = vmatpush3.bf16.msra.mxu1 %v1478_v9  ;;  %v693_v2 = vsub.s32 0, %v692_v0  ;;  %v701_v3 = vsub.s32 2, %v692_v0  ;;  %v697_v5 = vsub.s32 1, %v692_v0  ;;  %v705_v6 = vsub.s32 3, %v692_v0 }
 0x266   :  { %1451 = vmatprep.subr.bf16.mxu0 %v1450_v11  ;;  %1480 = vmatprep.subr.bf16.mxu1 %v1640_v50  ;;  %v713_v19 = vsub.s32 5, %v692_v0 }
 0x267   :  { %v694_v7 = vrot.slane %v689_v4, %v693_v2  ;;  %v702_v8 = vrot.slane %v689_v4, %v701_v3  ;;  %v698_v9 = vrot.slane %v689_v4, %v697_v5 }
 0x268   :  { %v714_v22 = vrot.slane %v689_v4, %v713_v19 }
 0x269   :  { %1453 = vmatpush1.bf16.msra.mxu0 %v1452_v17  ;;  %1482 = vmatpush3.bf16.msra.mxu1 %v1481_v18  ;;  %v709_v17 = vsub.s32 4, %v692_v0  ;;  %v717_v18 = vsub.s32 6, %v692_v0 }
 0x26a   :  { %1455 = vmatprep.subr.bf16.mxu0 %v1454_v20  ;;  %1483 = vmatprep.subr.bf16.mxu1 %v1640_v50 }
 0x26b   :  { %v710_v20 = vrot.slane %v689_v4, %v709_v17  ;;  %v718_v21 = vrot.slane %v689_v4, %v717_v18 }
 0x26d   :  { %1457 = vmatpush1.bf16.msra.mxu0 %v1456_v26  ;;  %1485 = vmatpush3.bf16.msra.mxu1 %v1484_v27 }
 0x26e   :  { %1459 = vmatprep.subr.bf16.mxu0 %v1458_v60  ;;  %1486 = vmatprep.subr.bf16.mxu1 %v1640_v50 }
 0x271   :  { %1461 = vmatpush1.bf16.msra.mxu0 %v1460_v34  ;;  %1488 = vmatpush3.bf16.msra.mxu1 %v1487_v35 }
 0x272   :  { %1463 = vmatprep.subr.bf16.mxu0 %v1462_v37  ;;  %1489 = vmatprep.subr.bf16.mxu1 %v1640_v50 }
 0x275   :  { %1465 = vmatpush1.bf16.msra.mxu0 %v1464_v43  ;;  %1491 = vmatpush3.bf16.msra.mxu1 %v1490_v44 }
 0x276   :  { %1467 = vmatprep.subr.bf16.mxu0 %v1466_v46  ;;  %1492 = vmatprep.subr.bf16.mxu1 %v1640_v50 }
 0x279   :  { %1469 = vmatpush1.bf16.msra.mxu0 %v1468_v53  ;;  %1494 = vmatpush3.bf16.msra.mxu1 %v1493_v54 }
 0x27a   :  { %1471 = vmatprep.subr.bf16.mxu0 %v1470_v56  ;;  %1495 = vmatprep.subr.bf16.mxu1 %v1640_v50  ;;  %v706_v50 = vrot.slane %v689_v4, %v705_v6 }
 0x27d   :  { %1473 = vmatpush1.bf16.msra.mxu0 %v1472_v61  ;;  %1497 = vmatpush3.bf16.msra.mxu1 %v1496_v62 }
 0x280   :  { %933 = vmatmul.mubr.f32.vlgmr.msra.gmra.mrb[6].mxu0 %v1760_v1  ;;  %1253 = vmatmul.mubr.f32.vlgmr.msra.gmra.mrb[8].mxu1 %v1760_v1 }
 0x333   :  { %v792_v10 = vpop.f32.mrb[4].mxu0  ;;  %v863_v11 = vpop.f32.mrb[6].mxu1 }
 0x334   :  { %v793_v12 = vadd.f32 %v792_v10, %v694_v7  ;;  %v864_v13 = vadd.f32 %v863_v11, %v702_v8  ;;  %v794_v14 = vpop.f32.mrb[5].mxu0  ;;  %v865_v1 = vpop.f32.mrb[7].mxu1 }
 0x335   :  { %v795_v15 = vadd.f32 %v794_v14, %v698_v9  ;;  %v866_v16 = vadd.f32 %v865_v1, %v706_v50 }
 0x336   :  { %1009 = vst [vmem:[#allocation10] sm:$0xff] %v793_v12  ;;  %1011 = vst [vmem:[#allocation10 + $0x10] sm:$0xff] %v864_v13 }
 0x337   :  { %1010 = vst [vmem:[#allocation10 + $0x8] sm:$0xff] %v795_v15  ;;  %1012 = vst [vmem:[#allocation10 + $0x18] sm:$0xff] %v866_v16 }
 0x353   :  { %v934_v23 = vpop.f32.mrb[6].mxu0  ;;  %v1005_v24 = vpop.f32.mrb[8].mxu1 }
 0x354   :  { %v935_v25 = vadd.f32 %v934_v23, %v710_v20  ;;  %v1006_v26 = vadd.f32 %v1005_v24, %v718_v21  ;;  %v936_v27 = vpop.f32.mrb[7].mxu0  ;;  %v1254_v28 = vpop.f32.mrb[9].mxu1 }
 0x355   :  { %v937_v60 = vadd.f32 %v936_v27, %v714_v22 }
 0x356   :  { %1013 = vst [vmem:[#allocation10 + $0x20] sm:$0xff] %v935_v25  ;;  %1015 = vst [vmem:[#allocation10 + $0x30] sm:$0xff] %v1006_v26 }
 0x357   :  { %1014 = vst [vmem:[#allocation10 + $0x28] sm:$0xff] %v937_v60 }
 0x358   :  { %1613 = shalt.err (!%p1610_p8)
}
 0x359   :  { %s1614_s10 = scalar_lea.hbm %s1798_s7, 896 }
 0x35a   :  { %p1615_p9 = scmp.ne.s32.totalorder %s1798_s7, %s1614_s10  ;;  %p1618_p10 = scmp.lt.u32.totalorder %s1614_s10, %s1798_s7 }
 0x35c   :  { %p1620_p11 = pnand %p1618_p10, %p1615_p9 }
 0x35e   :  { %1623 = shalt.err (!%p1620_p11)
}
 0x35f   :  { %1025 = dma.vmem_to_hbm [thread:$0]  %s1023_s29, 896, %s1798_s7, [#allocation4]  }
 0x360   :  { %1630 = dma.done.wait [#allocation4], 896  }
 0x361   :  { %1631 = vsyncadd [#allocation4], 4294966400 }
 0x362   :  { %1029 = vsyncpa [#allocation3], 1 }
 0x363   :  { %1030 = vsyncpa [#allocation6], 1 }
 0x364   :  { %1031 = vsyncpa [#allocation9], 1 }
 0x365   :  { %1032 = vsyncpa [#allocation4], 1 }

</bundles_post_ra>
